<compile_context>
chip_gen: v6e
topology: v6e:2x2x1
jax: 0.10.0
libtpu: 0.0.40
codegen_flags: <defaults>
</compile_context>

<pallas_src>
import jax
import jax.numpy as jnp
from jax.experimental import pallas as pl
from jax.experimental.pallas import tpu as pltpu


_MIN_PALLAS_ELEMS = 2048              # below this, per-call Pallas overhead dominates
_LANE_WIDTHS = (8192, 4096, 2048, 1024, 512, 256, 128)  # preferred lane-dense widths
_TILE_BYTE_BUDGET = 3 << 20           # ~3 MiB per array per pipeline buffer
_VMEM_LIMIT_BYTES = 48 << 20          # explicit scoped-VMEM limit (fits v7x 64 MiB)


def _round_up(x: int, m: int) -> int:
    return ((x + m - 1) // m) * m


def _sampling_kernel(mean_ref, log_var_ref, eps_ref, out_ref):
    # Pure streaming elementwise op: cast to f32 on the VPU, exp on the EUP,
    # FMA on the VPU, cast back at the store.  HBM-bandwidth bound.
    m = mean_ref[...].astype(jnp.float32)
    lv = log_var_ref[...].astype(jnp.float32)
    e = eps_ref[...].astype(jnp.float32)
    out_ref[...] = (m + jnp.exp(0.5 * lv) * e).astype(out_ref.dtype)


def _choose_block_rows(rows: int, cols: int) -> int:
    """Row-tile size from a lane-padded VMEM byte budget.

    The byte estimate uses the lane-padded width (cols rounded up to 128) and the
    widest per-stream element size (eps / f32 math = 4 B), so narrow or sub-32-bit
    inputs cannot silently blow past the scoped-VMEM limit.
    """
    lane_cols = _round_up(cols, 128)
    cap = _TILE_BYTE_BUDGET // (lane_cols * 4)
    cap = max(8, (cap // 8) * 8)
    if rows <= 8:
        return rows                      # full-dim block (valid: equals array dim)
    if rows <= cap:
        if rows >= 64:
            # Enough work: split into >=4 tiles so the pipeline overlaps DMA with
            # compute and (on v7x) the "parallel" grid axis can use both TensorCores.
            return min(rows, max(8, _round_up(pl.cdiv(rows, 4), 8)))
        return rows
    return cap


def _sampling_pallas_2d(mean2d, log_var2d, eps2d, out_dtype, block_rows=None):
    rows, cols = mean2d.shape
    if block_rows is None:
        tb = _choose_block_rows(rows, cols)
    else:  # testing override
        tb = min(int(block_rows), rows)
        tb = rows if rows <= 8 else max(8, (tb // 8) * 8)
    grid = (pl.cdiv(rows, tb),)
    spec = pl.BlockSpec((tb, cols), lambda i: (i, 0))

    n = rows * cols
    out_itemsize = jnp.dtype(out_dtype).itemsize
    cost = pl.CostEstimate(
        flops=3 * n,                      # mul, mul, add per element
        transcendentals=n,                # one exp per element
        bytes_accessed=n * (mean2d.dtype.itemsize + log_var2d.dtype.itemsize
                            + eps2d.dtype.itemsize + out_itemsize),
    )

    return pl.pallas_call(
        _sampling_kernel,
        out_shape=jax.ShapeDtypeStruct((rows, cols), out_dtype),
        grid=grid,
        in_specs=[spec, spec, spec],
        out_specs=spec,
        compiler_params=pltpu.CompilerParams(
            dimension_semantics=("parallel",),
            vmem_limit_bytes=_VMEM_LIMIT_BYTES,
        ),
        cost_estimate=cost,
    )(mean2d, log_var2d, eps2d)


def sampling(mean: jax.Array, log_var: jax.Array, key: jax.Array | None = None, *,
             seed: int = 0, out_dtype=None, block_rows: int | None = None) -> jax.Array:
    """VAE reparameterization: mean + exp(0.5*log_var) * N(0,1).

    `key` (a jax.random key) takes precedence over `seed`.  Output dtype defaults to
    promote(mean.dtype, float32) to match torch type promotion against an f32 eps.
    """
    assert mean.shape == log_var.shape and mean.ndim == 2
    batch, dim = mean.shape
    n = batch * dim
    if out_dtype is None:
        out_dtype = jnp.promote_types(mean.dtype, jnp.float32)
    if key is None:
        key = jax.random.PRNGKey(seed)

    # eps drawn outside the kernel (like the original module's numpy draw); the same
    # stream is used by every code path below, so results are seed-consistent.
    eps = jax.random.normal(key, (batch, dim), dtype=jnp.float32)

    if n < _MIN_PALLAS_ELEMS:
        # Sub-vreg-scale input: a fused XLA elementwise op beats Pallas launch cost.
        out = (mean.astype(jnp.float32)
               + jnp.exp(0.5 * log_var.astype(jnp.float32)) * eps)
        return out.astype(out_dtype)

    # Lane-dense layout: present the widest last dim (multiple of 128) that divides
    # n and still leaves >= 8 rows (full sublane use).  Reshape of a contiguous
    # array is free.
    cols = None
    for c in _LANE_WIDTHS:
        if n % c == 0 and n // c >= 8:
            cols = c
            break
    if cols is not None:
        rows = n // cols
        out = _sampling_pallas_2d(mean.reshape(rows, cols),
                                  log_var.reshape(rows, cols),
                                  eps.reshape(rows, cols),
                                  out_dtype, block_rows=block_rows)
        return out.reshape(batch, dim)

    # Non-128-divisible fallback: tile over batch with the full feature dim.
    # Stores are lane-masked but there is no extra HBM traffic; still mem-bound.
    return _sampling_pallas_2d(mean, log_var, eps, out_dtype, block_rows=block_rows)


if __name__ == "__main__":
    key = jax.random.PRNGKey(0)
    k1, k2, k3, k4 = jax.random.split(key, 4)
    ok = True

    def ref(mean, lv, seed):
        eps = jax.random.normal(jax.random.PRNGKey(seed), mean.shape, jnp.float32)
        return mean.astype(jnp.float32) + jnp.exp(0.5 * lv.astype(jnp.float32)) * eps

    # Case 1: VAE-like shape -> lane-dense Pallas path.
    b, d = 64, 256
    mean = jax.random.normal(k1, (b, d), dtype=jnp.float32)
    log_var = 0.5 * jax.random.normal(k2, (b, d), dtype=jnp.float32)
    out = jax.block_until_ready(sampling(mean, log_var, seed=42))
    ok &= out.shape == (b, d) and out.dtype == jnp.float32
    ok &= bool(jnp.all(jnp.isfinite(out)))
    ok &= bool(jnp.allclose(out, ref(mean, log_var, 42), atol=1e-5, rtol=1e-5))
    out_b = sampling(mean, log_var, seed=42)
    out_c = sampling(mean, log_var, seed=7)
    ok &= bool(jnp.array_equal(out, out_b))        # deterministic in the seed
    ok &= not bool(jnp.array_equal(out, out_c))    # different seed -> different draw

    # Case 2: larger shape, forced small row tiles -> multi-step grid with a
    # "parallel" axis (exercises the pipelined path).
    b2, d2 = 256, 512
    m2 = jax.random.normal(k3, (b2, d2), dtype=jnp.float32)
    lv2 = 0.3 * jax.random.normal(k4, (b2, d2), dtype=jnp.float32)
    o2 = jax.block_until_ready(sampling(m2, lv2, seed=3, block_rows=8))
    ok &= bool(jnp.allclose(o2, ref(m2, lv2, 3), atol=1e-5, rtol=1e-5))

    # Case 3: non-128-divisible feature dim -> (batch, dim) row-tiled fallback.
    b3, d3 = 64, 33
    m3 = jax.random.normal(jax.random.fold_in(k1, 1), (b3, d3), dtype=jnp.float32)
    lv3 = 0.5 * jax.random.normal(jax.random.fold_in(k2, 1), (b3, d3),
                                  dtype=jnp.float32)
    o3 = jax.block_until_ready(sampling(m3, lv3, seed=11, block_rows=16))
    ok &= bool(jnp.allclose(o3, ref(m3, lv3, 11), atol=1e-5, rtol=1e-5))

    # Case 4: tiny input -> fused XLA fallback; same stream as the Pallas path.
    b4, d4 = 4, 32
    m4 = jax.random.normal(jax.random.fold_in(k1, 2), (b4, d4), dtype=jnp.float32)
    lv4 = jax.random.normal(jax.random.fold_in(k2, 2), (b4, d4), dtype=jnp.float32)
    o4 = jax.block_until_ready(sampling(m4, lv4, seed=5))
    ok &= bool(jnp.allclose(o4, ref(m4, lv4, 5), atol=1e-5, rtol=1e-5))

    assert ok
    print("KERNEL_OK")
</pallas_src>

<mosaic_0001>
module attributes {stable_mosaic.version = 11 : i64} {
  func.func @_sampling_kernel(%arg0: i32, %arg1: memref<8x2048xf32, #tpu.memory_space<vmem>>, %arg2: memref<8x2048xf32, #tpu.memory_space<vmem>>, %arg3: memref<8x2048xf32, #tpu.memory_space<vmem>>, %arg4: memref<8x2048xf32, #tpu.memory_space<vmem>>) attributes {dimension_semantics = [#tpu.dimension_semantics<parallel>], iteration_bounds = array<i64: 1>, scalar_prefetch = 0 : i64, scratch_operands = 0 : i64, tpu.core_type = #tpu.core_type<tc>, window_params = [{transform_indices = @transform_0, window_bounds = array<i64: 8, 2048>}, {transform_indices = @transform_1, window_bounds = array<i64: 8, 2048>}, {transform_indices = @transform_2, window_bounds = array<i64: 8, 2048>}, {transform_indices = @transform_3, window_bounds = array<i64: 8, 2048>}]} {
    %c0 = arith.constant 0 : index
    %c0_0 = arith.constant 0 : index
    %0 = vector.load %arg1[%c0, %c0_0] : memref<8x2048xf32, #tpu.memory_space<vmem>>, vector<8x2048xf32>
    %c0_1 = arith.constant 0 : index
    %c0_2 = arith.constant 0 : index
    %1 = vector.load %arg2[%c0_1, %c0_2] : memref<8x2048xf32, #tpu.memory_space<vmem>>, vector<8x2048xf32>
    %c0_3 = arith.constant 0 : index
    %c0_4 = arith.constant 0 : index
    %2 = vector.load %arg3[%c0_3, %c0_4] : memref<8x2048xf32, #tpu.memory_space<vmem>>, vector<8x2048xf32>
    %cst = arith.constant 5.000000e-01 : f32
    %3 = vector.broadcast %cst : f32 to vector<8x2048xf32>
    %4 = arith.mulf %3, %1 : vector<8x2048xf32>
    %5 = math.exp %4 : vector<8x2048xf32>
    %6 = arith.mulf %5, %2 : vector<8x2048xf32>
    %7 = arith.addf %0, %6 : vector<8x2048xf32>
    %c0_5 = arith.constant 0 : index
    %c0_6 = arith.constant 0 : index
    %8 = vector.load %arg4[%c0_5, %c0_6] : memref<8x2048xf32, #tpu.memory_space<vmem>>, vector<8x2048xf32>
    tpu.vector_store %arg4[%c0_5, %c0_6], %7 {strides = array<i32>} : memref<8x2048xf32, #tpu.memory_space<vmem>>, vector<8x2048xf32>,
    return
  }
  func.func @transform_0(%arg0: i32) -> (i32, i32) {
    %c0_i32 = arith.constant 0 : i32
    %c0_i32_0 = arith.constant 0 : i32
    return %arg0, %c0_i32 : i32, i32
  }
  func.func @transform_1(%arg0: i32) -> (i32, i32) {
    %c0_i32 = arith.constant 0 : i32
    %c0_i32_0 = arith.constant 0 : i32
    return %arg0, %c0_i32 : i32, i32
  }
  func.func @transform_2(%arg0: i32) -> (i32, i32) {
    %c0_i32 = arith.constant 0 : i32
    %c0_i32_0 = arith.constant 0 : i32
    return %arg0, %c0_i32 : i32, i32
  }
  func.func @transform_3(%arg0: i32) -> (i32, i32) {
    %c0_i32 = arith.constant 0 : i32
    %c0_i32_0 = arith.constant 0 : i32
    return %arg0, %c0_i32 : i32, i32
  }
}

</mosaic_0001>

<bundles_post_ra>
// kernel: tpu_custom_call.1
= control target key start
LH: loop header
LB: loop body
LE: loop exit
PB: predicated region body
PF: predicated region fallthrough
CT: control target
= control target key end

     0   :  { %8 = vsyncpa [#allocation3], 0  ;;  %s368_s0 = inlined_call_operand.hbm [shape: f32[8,2048], index: 0, kind: input, shape index: {}]   ;;  %s369_s1 = inlined_call_operand.hbm [shape: f32[8,2048], index: 1, kind: input, shape index: {}]   ;;  %s370_s2 = inlined_call_operand.hbm [shape: f32[8,2048], index: 2, kind: input, shape index: {}]   ;;  %s371_s3 = inlined_call_operand.hbm [shape: f32[8,2048], index: 3, kind: output, shape index: {}]  }
   0x1   :  { %9 = vsyncpa [#allocation6], 0 }
   0x2   :  { %10 = vsyncpa [#allocation4], 0  ;;  %s332_s12 = smov [#allocation5]   ;;  %s333_s14 = smov [#allocation2]  }
   0x3   :  { %s27_s13 = sshll.u32 %s332_s12, 4  ;;  %s17_s15 = sshll.u32 %s333_s14, 4  ;;  %s28_s13 = int_to_ptr.vmem [resolvable:$true] %s27_s13  ;;  %s18_s15 = int_to_ptr.vmem [resolvable:$true] %s17_s15 }
   0x4   :  { %s254_s16 = scalar_lea.vmem %s28_s13, 2048  ;;  %p259_p1 = scmp.lt.s32.totalorder %s28_s13, %s28_s13 }
   0x5   :  { %p255_p0 = scmp.ne.s32.totalorder %s28_s13, %s254_s16  ;;  %p260_p2 = scmp.lt.s32.totalorder %s254_s16, %s254_s16 }
   0x7   :  { %p261_p3 = por %p260_p2, %p259_p1 }
   0x9   :  { %p262_p4 = pnand %p261_p3, %p255_p0 }
   0xb   :  { %265 = shalt.err (!%p262_p4)
}
   0xc   :  { %30 = dma.hbm_to_vmem [thread:$0]  %s369_s1, 2048, %s28_s13, [#allocation6]  }
   0xd   :  { %s274_s19 = scalar_lea.vmem %s18_s15, 2048  ;;  %p279_p6 = scmp.lt.s32.totalorder %s18_s15, %s18_s15 }
   0xe   :  { %p275_p5 = scmp.ne.s32.totalorder %s18_s15, %s274_s19  ;;  %p280_p7 = scmp.lt.s32.totalorder %s274_s19, %s274_s19 }
  0x10   :  { %p281_p8 = por %p280_p7, %p279_p6 }
  0x12   :  { %p282_p9 = pnand %p281_p8, %p275_p5 }
  0x14   :  { %285 = shalt.err (!%p282_p9)
}
  0x15   :  { %20 = dma.hbm_to_vmem [thread:$0]  %s368_s0, 2048, %s18_s15, [#allocation3]  }
  0x16   :  { %s334_s22 = smov [#allocation7]  }
  0x17   :  { %s37_s23 = sshll.u32 %s334_s22, 4  ;;  %s38_s23 = int_to_ptr.vmem [resolvable:$true] %s37_s23 }
  0x18   :  { %s294_s24 = scalar_lea.vmem %s38_s23, 2048  ;;  %p299_p11 = scmp.lt.s32.totalorder %s38_s23, %s38_s23 }
  0x19   :  { %p295_p10 = scmp.ne.s32.totalorder %s38_s23, %s294_s24  ;;  %p300_p12 = scmp.lt.s32.totalorder %s294_s24, %s294_s24 }
  0x1b   :  { %p301_p13 = por %p300_p12, %p299_p11 }
  0x1d   :  { %p302_p0 = pnand %p301_p13, %p295_p10 }
  0x1f   :  { %305 = shalt.err (!%p302_p0)
}
  0x20   :  { %40 = dma.hbm_to_vmem [thread:$0]  %s370_s2, 2048, %s38_s23, [#allocation6]  }
  0x21   :  { %326 = dma.done.wait [#allocation3], 2048  }
  0x22   :  { %327 = vsyncadd [#allocation3], 4294965248 }
  0x23   :  { %328 = dma.done.wait [#allocation6], 4096  }
  0x24   :  { %329 = vsyncadd [#allocation6], 4294963200  ;;  %v66_v0 = vld [vmem:[#allocation5] sm:$0xff]  ;;  %v67_v2 = vld [vmem:[#allocation5 + $0x8] sm:$0xff]  ;;  %s335_s0 = smov [#allocation8]  }
  0x25   :  { %v98_v1 = vmul.f32 0.5, %v66_v0  ;;  %v99_v3 = vmul.f32 0.5, %v67_v2  ;;  %v68_v4 = vld [vmem:[#allocation5 + $0x10] sm:$0xff]  ;;  %v69_v7 = vld [vmem:[#allocation5 + $0x18] sm:$0xff]  ;;  %v70_v10 = vld [vmem:[#allocation5 + $0x20] sm:$0xff]  ;;  %s200_s2 = sshll.u32 %s335_s0, 4  ;;  %s201_s2 = int_to_ptr.vmem [resolvable:$true] %s200_s2 }
  0x26   :  { %v100_v6 = vmul.f32 0.5, %v68_v4  ;;  %v101_v9 = vmul.f32 0.5, %v69_v7  ;;  %v102_v12 = vmul.f32 0.5, %v70_v10  ;;  %v71_v13 = vld [vmem:[#allocation5 + $0x28] sm:$0xff]  ;;  %v72_v16 = vld [vmem:[#allocation5 + $0x30] sm:$0xff]  ;;  %v73_v19 = vld [vmem:[#allocation5 + $0x38] sm:$0xff]  ;;  %p311_p2 = scmp.lt.s32.totalorder %s201_s2, %s201_s2 }
  0x27   :  { %v114_v5 = vmul.f32 1.442695, %v98_v1  ;;  %v116_v8 = vmul.f32 1.442695, %v99_v3  ;;  %v103_v15 = vmul.f32 0.5, %v71_v13  ;;  %v104_v18 = vmul.f32 0.5, %v72_v16 }
  0x28   :  { %v118_v11 = vmul.f32 1.442695, %v100_v6  ;;  %v120_v14 = vmul.f32 1.442695, %v101_v9  ;;  %v122_v17 = vmul.f32 1.442695, %v102_v12 }
  0x29   :  { %214 = vpow2.f32 %v114_v5  ;;  %v124_v20 = vmul.f32 1.442695, %v103_v15  ;;  %v105_v21 = vmul.f32 0.5, %v73_v19  ;;  %v74_v22 = vld [vmem:[#allocation5 + $0x40] sm:$0xff]  ;;  %v126_v23 = vmul.f32 1.442695, %v104_v18 }
  0x2a   :  { %216 = vpow2.f32 %v116_v8  ;;  %v106_v24 = vmul.f32 0.5, %v74_v22  ;;  %v75_v25 = vld [vmem:[#allocation5 + $0x48] sm:$0xff]  ;;  %v76_v28 = vld [vmem:[#allocation5 + $0x50] sm:$0xff]  ;;  %v77_v31 = vld [vmem:[#allocation5 + $0x58] sm:$0xff]  ;;  %s306_s26 = scalar_lea.vmem %s201_s2, 2048 }
  0x2b   :  { %218 = vpow2.f32 %v118_v11  ;;  %v128_v26 = vmul.f32 1.442695, %v105_v21  ;;  %v107_v27 = vmul.f32 0.5, %v75_v25  ;;  %v108_v30 = vmul.f32 0.5, %v76_v28  ;;  %v78_v34 = vld [vmem:[#allocation5 + $0x60] sm:$0xff]  ;;  %v79_v37 = vld [vmem:[#allocation5 + $0x68] sm:$0xff]  ;;  %p307_p1 = scmp.ne.s32.totalorder %s201_s2, %s306_s26  ;;  %p312_p3 = scmp.lt.s32.totalorder %s306_s26, %s306_s26 }
  0x2c   :  { %220 = vpow2.f32 %v120_v14  ;;  %v130_v29 = vmul.f32 1.442695, %v106_v24  ;;  %v109_v33 = vmul.f32 0.5, %v77_v31  ;;  %v110_v36 = vmul.f32 0.5, %v78_v34  ;;  %v80_v40 = vld [vmem:[#allocation5 + $0x70] sm:$0xff]  ;;  %v81_v43 = vld [vmem:[#allocation5 + $0x78] sm:$0xff] }
  0x2d   :  { %222 = vpow2.f32 %v122_v17  ;;  %v132_v32 = vmul.f32 1.442695, %v107_v27  ;;  %v134_v35 = vmul.f32 1.442695, %v108_v30  ;;  %v111_v39 = vmul.f32 0.5, %v79_v37  ;;  %v82_v44 = vld [vmem:[#allocation7] sm:$0xff]  ;;  %p313_p4 = por %p312_p3, %p311_p2 }
  0x2e   :  { %224 = vpow2.f32 %v124_v20  ;;  %v136_v38 = vmul.f32 1.442695, %v109_v33  ;;  %v138_v41 = vmul.f32 1.442695, %v110_v36  ;;  %v112_v42 = vmul.f32 0.5, %v80_v40  ;;  %v83_v47 = vld [vmem:[#allocation7 + $0x8] sm:$0xff] }
  0x2f   :  { %226 = vpow2.f32 %v126_v23  ;;  %v140_v45 = vmul.f32 1.442695, %v111_v39  ;;  %v113_v46 = vmul.f32 0.5, %v81_v43  ;;  %v50_v50 = vld [vmem:[#allocation2] sm:$0xff]  ;;  %v84_v51 = vld [vmem:[#allocation7 + $0x10] sm:$0xff]  ;;  %v51_v55 = vld [vmem:[#allocation2 + $0x8] sm:$0xff]  ;;  %p314_p5 = pnand %p313_p4, %p307_p1 }
  0x30   :  { %228 = vpow2.f32 %v128_v26  ;;  %v142_v48 = vmul.f32 1.442695, %v112_v42  ;;  %v85_v56 = vld [vmem:[#allocation7 + $0x18] sm:$0xff]  ;;  %v52_v59 = vld [vmem:[#allocation2 + $0x10] sm:$0xff]  ;;  %v86_v60 = vld [vmem:[#allocation7 + $0x20] sm:$0xff] }
  0x31   :  { %230 = vpow2.f32 %v130_v29  ;;  %v144_v52 = vmul.f32 1.442695, %v113_v46  ;;  %v53_v0 = vld [vmem:[#allocation2 + $0x18] sm:$0xff]  ;;  %v87_v1 = vld [vmem:[#allocation7 + $0x28] sm:$0xff]  ;;  %v54_v5 = vld [vmem:[#allocation2 + $0x20] sm:$0xff] }
  0x32   :  { %232 = vpow2.f32 %v132_v32  ;;  %v88_v6 = vld [vmem:[#allocation7 + $0x30] sm:$0xff]  ;;  %v55_v10 = vld [vmem:[#allocation2 + $0x28] sm:$0xff]  ;;  %v89_v11 = vld [vmem:[#allocation7 + $0x38] sm:$0xff] }
  0x33   :  { %234 = vpow2.f32 %v134_v35  ;;  %v56_v15 = vld [vmem:[#allocation2 + $0x30] sm:$0xff]  ;;  %v90_v16 = vld [vmem:[#allocation7 + $0x40] sm:$0xff]  ;;  %v57_v20 = vld [vmem:[#allocation2 + $0x38] sm:$0xff] }
  0x34   :  { %236 = vpow2.f32 %v136_v38  ;;  %v91_v21 = vld [vmem:[#allocation7 + $0x48] sm:$0xff]  ;;  %v58_v25 = vld [vmem:[#allocation2 + $0x40] sm:$0xff]  ;;  %v92_v26 = vld [vmem:[#allocation7 + $0x50] sm:$0xff] }
  0x35   :  { %238 = vpow2.f32 %v138_v41  ;;  %v59_v30 = vld [vmem:[#allocation2 + $0x48] sm:$0xff]  ;;  %v93_v31 = vld [vmem:[#allocation7 + $0x58] sm:$0xff]  ;;  %v60_v35 = vld [vmem:[#allocation2 + $0x50] sm:$0xff] }
  0x36   :  { %v215_v49 = vpop.eup %214  ;;  %240 = vpow2.f32 %v140_v45  ;;  %v94_v36 = vld [vmem:[#allocation7 + $0x60] sm:$0xff]  ;;  %v61_v40 = vld [vmem:[#allocation2 + $0x58] sm:$0xff]  ;;  %v95_v41 = vld [vmem:[#allocation7 + $0x68] sm:$0xff] }
  0x37   :  { %v217_v53 = vpop.eup %216  ;;  %v146_v54 = vmul.f32 %v215_v49, %v82_v44  ;;  %242 = vpow2.f32 %v142_v48  ;;  %v62_v45 = vld [vmem:[#allocation2 + $0x60] sm:$0xff]  ;;  %v96_v46 = vld [vmem:[#allocation7 + $0x70] sm:$0xff] }
  0x38   :  { %v219_v57 = vpop.eup %218  ;;  %v147_v58 = vmul.f32 %v217_v53, %v83_v47  ;;  %244 = vpow2.f32 %v144_v52 }
  0x39   :  { %v221_v61 = vpop.eup %220  ;;  %v162_v62 = vadd.f32 %v146_v54, %v50_v50  ;;  %v148_v63 = vmul.f32 %v219_v57, %v84_v51  ;;  %v63_v50 = vld [vmem:[#allocation2 + $0x68] sm:$0xff]  ;;  %v97_v51 = vld [vmem:[#allocation7 + $0x78] sm:$0xff] }
  0x3a   :  { %v223_v2 = vpop.eup %222  ;;  %v163_v3 = vadd.f32 %v147_v58, %v51_v55  ;;  %v149_v4 = vmul.f32 %v221_v61, %v85_v56  ;;  %v64_v55 = vld [vmem:[#allocation2 + $0x70] sm:$0xff] }
  0x3b   :  { %v225_v7 = vpop.eup %224  ;;  %178 = vst [vmem:[#allocation8] sm:$0xff] %v162_v62  ;;  %v164_v8 = vadd.f32 %v148_v63, %v52_v59  ;;  %v150_v9 = vmul.f32 %v223_v2, %v86_v60  ;;  %v65_v59 = vld [vmem:[#allocation2 + $0x78] sm:$0xff] }
  0x3c   :  { %v227_v12 = vpop.eup %226  ;;  %179 = vst [vmem:[#allocation8 + $0x8] sm:$0xff] %v163_v3  ;;  %v165_v13 = vadd.f32 %v149_v4, %v53_v0  ;;  %v151_v14 = vmul.f32 %v225_v7, %v87_v1 }
  0x3d   :  { %v229_v17 = vpop.eup %228  ;;  %180 = vst [vmem:[#allocation8 + $0x10] sm:$0xff] %v164_v8  ;;  %v166_v18 = vadd.f32 %v150_v9, %v54_v5  ;;  %v152_v19 = vmul.f32 %v227_v12, %v88_v6 }
  0x3e   :  { %v231_v22 = vpop.eup %230  ;;  %181 = vst [vmem:[#allocation8 + $0x18] sm:$0xff] %v165_v13  ;;  %v167_v23 = vadd.f32 %v151_v14, %v55_v10  ;;  %v153_v24 = vmul.f32 %v229_v17, %v89_v11 }
  0x3f   :  { %v233_v27 = vpop.eup %232  ;;  %182 = vst [vmem:[#allocation8 + $0x20] sm:$0xff] %v166_v18  ;;  %v168_v28 = vadd.f32 %v152_v19, %v56_v15  ;;  %v154_v29 = vmul.f32 %v231_v22, %v90_v16 }
  0x40   :  { %v235_v32 = vpop.eup %234  ;;  %183 = vst [vmem:[#allocation8 + $0x28] sm:$0xff] %v167_v23  ;;  %v169_v33 = vadd.f32 %v153_v24, %v57_v20  ;;  %v155_v34 = vmul.f32 %v233_v27, %v91_v21 }
  0x41   :  { %v237_v37 = vpop.eup %236  ;;  %184 = vst [vmem:[#allocation8 + $0x30] sm:$0xff] %v168_v28  ;;  %v170_v38 = vadd.f32 %v154_v29, %v58_v25  ;;  %v156_v39 = vmul.f32 %v235_v32, %v92_v26 }
  0x42   :  { %v239_v42 = vpop.eup %238  ;;  %185 = vst [vmem:[#allocation8 + $0x38] sm:$0xff] %v169_v33  ;;  %v171_v43 = vadd.f32 %v155_v34, %v59_v30  ;;  %v157_v44 = vmul.f32 %v237_v37, %v93_v31 }
  0x43   :  { %v241_v47 = vpop.eup %240  ;;  %186 = vst [vmem:[#allocation8 + $0x40] sm:$0xff] %v170_v38  ;;  %v172_v48 = vadd.f32 %v156_v39, %v60_v35  ;;  %v158_v49 = vmul.f32 %v239_v42, %v94_v36 }
  0x44   :  { %v243_v52 = vpop.eup %242  ;;  %187 = vst [vmem:[#allocation8 + $0x48] sm:$0xff] %v171_v43  ;;  %v173_v53 = vadd.f32 %v157_v44, %v61_v40  ;;  %v159_v54 = vmul.f32 %v241_v47, %v95_v41 }
  0x45   :  { %v245_v56 = vpop.eup %244  ;;  %188 = vst [vmem:[#allocation8 + $0x50] sm:$0xff] %v172_v48  ;;  %v174_v57 = vadd.f32 %v158_v49, %v62_v45  ;;  %v160_v58 = vmul.f32 %v243_v52, %v96_v46 }
  0x46   :  { %189 = vst [vmem:[#allocation8 + $0x58] sm:$0xff] %v173_v53  ;;  %v175_v60 = vadd.f32 %v159_v54, %v63_v50  ;;  %v161_v61 = vmul.f32 %v245_v56, %v97_v51 }
  0x47   :  { %190 = vst [vmem:[#allocation8 + $0x60] sm:$0xff] %v174_v57  ;;  %v176_v62 = vadd.f32 %v160_v58, %v64_v55 }
  0x48   :  { %191 = vst [vmem:[#allocation8 + $0x68] sm:$0xff] %v175_v60  ;;  %v177_v63 = vadd.f32 %v161_v61, %v65_v59 }
  0x49   :  { %192 = vst [vmem:[#allocation8 + $0x70] sm:$0xff] %v176_v62 }
  0x4a   :  { %193 = vst [vmem:[#allocation8 + $0x78] sm:$0xff] %v177_v63 }
  0x4b   :  { %317 = shalt.err (!%p314_p5)
}
  0x4c   :  { %203 = dma.vmem_to_hbm [thread:$0]  %s201_s2, 2048, %s371_s3, [#allocation4]  }
  0x4d   :  { %330 = dma.done.wait [#allocation4], 2048  }
  0x4e   :  { %331 = vsyncadd [#allocation4], 4294965248 }
  0x4f   :  { %207 = vsyncpa [#allocation3], 1 }
  0x50   :  { %208 = vsyncpa [#allocation6], 1 }
  0x51   :  { %209 = vsyncpa [#allocation4], 1 }

</bundles_post_ra>
